<compile_context>
chip_gen: v6e
topology: v6e:2x2x1
jax: 0.10.0
libtpu: 0.0.40
codegen_flags: <defaults>
</compile_context>

<pallas_src>
import jax
import jax.numpy as jnp
from jax.experimental import pallas as pl
from jax.experimental.pallas import tpu as pltpu

LOGIT_DIM = 20
HIDDEN_DIMS = (512, 16)


def _mlp_sigmoid_kernel(llm_ref, slm_ref, w1_ref, b1_ref, w2_ref, b2_ref,
                        w3r_ref, b3d_ref, o_ref):
    # Layer 1: single fused dot on the lane-concatenated [TB, 40] bf16 input.
    x = jnp.concatenate([llm_ref[...], slm_ref[...]], axis=-1)
    h1 = jnp.dot(x, w1_ref[...], preferred_element_type=jnp.float32)
    h1 = jnp.maximum(h1 + b1_ref[...], 0.0)                        # f32 bias+ReLU
    # Layer 2: bf16 operands, f32 accumulation.
    h2 = jnp.dot(h1.astype(jnp.bfloat16), w2_ref[...],
                 preferred_element_type=jnp.float32) + b2_ref[...]
    h2 = jnp.maximum(h2, 0.0)                                       # ReLU
    # Layer 3 folded: softmax(2 logits) + renorm == sigmoid(logit difference).
    # N=1 projection on the VPU (multiply + lane reduce) instead of the MXU.
    d = jnp.sum(h2 * w3r_ref[...], axis=-1, keepdims=True) + b3d_ref[...]   # [TB,1]
    # Sigmoid via EUP exp + approximate reciprocal (keeps the VALU slot free).
    o_ref[...] = pl.reciprocal(1.0 + jnp.exp(-d), approx=True)


def init_params(key, logit_dim=LOGIT_DIM, hidden_dims=HIDDEN_DIMS):
    """Deterministic kaiming_normal_(fan_in, relu) init, biases 0.1 / [0.5, 0.5]."""
    dims = [2 * logit_dim, hidden_dims[0], hidden_dims[1], 2]
    keys = jax.random.split(key, 3)
    params = {}
    for i, (fan_in, fan_out) in enumerate(zip(dims[:-1], dims[1:])):
        std = (2.0 / fan_in) ** 0.5
        # stored as [in, out] (transpose of torch's [out, in] layout)
        params[f"w{i+1}"] = jax.random.normal(keys[i], (fan_in, fan_out), jnp.float32) * std
        if i == 2:
            params[f"b{i+1}"] = jnp.array([[0.5, 0.5]], jnp.float32)       # [1, 2]
        else:
            params[f"b{i+1}"] = jnp.full((1, fan_out), 0.1, jnp.float32)   # [1, out]
    return params


def _round_up(x, m):
    return ((x + m - 1) // m) * m


def weight_network_forward(llm_logits, slm_logits, params,
                           logit_dim=LOGIT_DIM, block_b=1024):
    # --- glue: top-k in the input dtype (same descending-sorted values as torch.topk) ---
    topk_llm, _ = jax.lax.top_k(llm_logits, logit_dim)
    topk_slm, _ = jax.lax.top_k(slm_logits, logit_dim)

    B = topk_llm.shape[0]
    h0, h1d = HIDDEN_DIMS

    # bf16 dot operands: halves the streamed input DMA, MXU at native rate.
    topk_llm = topk_llm.astype(jnp.bfloat16)
    topk_slm = topk_slm.astype(jnp.bfloat16)

    # Batch tile: multiple of 16 (bf16 sublane packing), capped at block_b, and
    # chosen so large batches produce >= 4 grid steps (v7x megacore sharding).
    B16 = _round_up(B, 16)
    TB = max(16, min(block_b, B16, _round_up(pl.cdiv(B16, 4), 16)))
    Bp = _round_up(B, TB)
    if Bp != B:
        # Zero-pad the small bf16 top-k arrays only when needed; padded rows
        # flow through the MLP safely and are sliced off below.
        pad = ((0, Bp - B), (0, 0))
        topk_llm = jnp.pad(topk_llm, pad)
        topk_slm = jnp.pad(topk_slm, pad)

    # Weights: dot operands in bf16, everything else f32.
    w1 = params["w1"].astype(jnp.bfloat16)                             # [40, 512]
    w2 = params["w2"].astype(jnp.bfloat16)                             # [512, 16]
    b1 = params["b1"]                                                   # [1, 512]
    b2 = params["b2"]                                                   # [1, 16]
    # Fold the 2-way softmax + renorm: only the logit difference matters.
    w3row = (params["w3"][:, 0] - params["w3"][:, 1]).reshape(1, h1d)   # [1, 16]
    b3d = params["b3"][:, 0:1] - params["b3"][:, 1:2]                   # [1, 1]

    def pinned(shape):
        return pl.BlockSpec(shape, lambda i: (0,) * len(shape))

    p0 = pl.pallas_call(
        _mlp_sigmoid_kernel,
        out_shape=jax.ShapeDtypeStruct((Bp, 1), jnp.float32),
        grid=(Bp // TB,),
        in_specs=[
            pl.BlockSpec((TB, logit_dim), lambda i: (i, 0)),   # topk_llm tile
            pl.BlockSpec((TB, logit_dim), lambda i: (i, 0)),   # topk_slm tile
            pinned((2 * logit_dim, h0)), pinned((1, h0)),      # w1, b1
            pinned((h0, h1d)), pinned((1, h1d)),               # w2, b2
            pinned((1, h1d)), pinned((1, 1)),                  # w3 diff row, b3 diff
        ],
        out_specs=pl.BlockSpec((TB, 1), lambda i: (i, 0)),
        compiler_params=pltpu.CompilerParams(
            dimension_semantics=("parallel",),
            vmem_limit_bytes=16 << 20,
        ),
    )(topk_llm, topk_slm, w1, b1, w2, b2, w3row, b3d)

    p0 = p0[:B]
    return jnp.concatenate([p0, 1.0 - p0], axis=-1)


def _reference(llm_logits, slm_logits, params, logit_dim=LOGIT_DIM):
    topk_llm, _ = jax.lax.top_k(llm_logits.astype(jnp.float32), logit_dim)
    topk_slm, _ = jax.lax.top_k(slm_logits.astype(jnp.float32), logit_dim)
    x = jnp.concatenate([topk_llm, topk_slm], axis=-1)
    h = jnp.maximum(x @ params["w1"] + params["b1"], 0.0)
    h = jnp.maximum(h @ params["w2"] + params["b2"], 0.0)
    logits = h @ params["w3"] + params["b3"]
    raw = jax.nn.softmax(logits, axis=-1)
    return raw / raw.sum(axis=-1, keepdims=True)


if __name__ == "__main__":
    key = jax.random.PRNGKey(0)
    k_params, k_llm, k_slm = jax.random.split(key, 3)

    params = init_params(k_params)

    batch, vocab = 4, 64
    llm_logits = jax.random.normal(k_llm, (batch, vocab), jnp.float32)
    slm_logits = jax.random.normal(k_slm, (batch, vocab), jnp.float32)

    out = weight_network_forward(llm_logits, slm_logits, params)
    out = jax.block_until_ready(out)

    ref = _reference(llm_logits, slm_logits, params)
    assert out.shape == (batch, 2)
    # bf16 dot operands + approx reciprocal -> relaxed tolerance vs f32 reference.
    assert jnp.allclose(out, ref, atol=2e-2, rtol=2e-2)
    assert jnp.allclose(out.sum(axis=-1), 1.0, atol=1e-5)

    print("KERNEL_OK")
</pallas_src>

<mosaic_0001>
module attributes {stable_mosaic.version = 11 : i64} {
  func.func @_mlp_sigmoid_kernel(%arg0: i32, %arg1: memref<16x20xbf16, #tpu.memory_space<vmem>>, %arg2: memref<16x20xbf16, #tpu.memory_space<vmem>>, %arg3: memref<40x512xbf16, #tpu.memory_space<vmem>>, %arg4: memref<1x512xf32, #tpu.memory_space<vmem>>, %arg5: memref<512x16xbf16, #tpu.memory_space<vmem>>, %arg6: memref<1x16xf32, #tpu.memory_space<vmem>>, %arg7: memref<1x16xf32, #tpu.memory_space<vmem>>, %arg8: memref<1x1xf32, #tpu.memory_space<vmem>>, %arg9: memref<16x1xf32, #tpu.memory_space<vmem>>) attributes {dimension_semantics = [#tpu.dimension_semantics<parallel>], iteration_bounds = array<i64: 1>, scalar_prefetch = 0 : i64, scratch_operands = 0 : i64, tpu.core_type = #tpu.core_type<tc>, window_params = [{transform_indices = @transform_0, window_bounds = array<i64: 16, 20>}, {transform_indices = @transform_1, window_bounds = array<i64: 16, 20>}, {pipeline_mode = #tpu.pipeline_mode<synchronous>, transform_indices = @transform_2, window_bounds = array<i64: 40, 512>}, {pipeline_mode = #tpu.pipeline_mode<synchronous>, transform_indices = @transform_3, window_bounds = array<i64: 1, 512>}, {pipeline_mode = #tpu.pipeline_mode<synchronous>, transform_indices = @transform_4, window_bounds = array<i64: 512, 16>}, {pipeline_mode = #tpu.pipeline_mode<synchronous>, transform_indices = @transform_5, window_bounds = array<i64: 1, 16>}, {pipeline_mode = #tpu.pipeline_mode<synchronous>, transform_indices = @transform_6, window_bounds = array<i64: 1, 16>}, {pipeline_mode = #tpu.pipeline_mode<synchronous>, transform_indices = @transform_7, window_bounds = array<i64: 1, 1>}, {transform_indices = @transform_8, window_bounds = array<i64: 16, 1>}]} {
    %c0 = arith.constant 0 : index
    %c0_0 = arith.constant 0 : index
    %0 = vector.load %arg1[%c0, %c0_0] : memref<16x20xbf16, #tpu.memory_space<vmem>>, vector<16x20xbf16>
    %c0_1 = arith.constant 0 : index
    %c0_2 = arith.constant 0 : index
    %1 = vector.load %arg2[%c0_1, %c0_2] : memref<16x20xbf16, #tpu.memory_space<vmem>>, vector<16x20xbf16>
    %2 = tpu.concatenate %0, %1 in 1 : vector<16x20xbf16>, vector<16x20xbf16> -> vector<16x40xbf16>
    %c0_3 = arith.constant 0 : index
    %c0_4 = arith.constant 0 : index
    %3 = vector.load %arg3[%c0_3, %c0_4] : memref<40x512xbf16, #tpu.memory_space<vmem>>, vector<40x512xbf16>
    %cst = arith.constant dense<0.000000e+00> : vector<16x512xf32>
    %4 = tpu.matmul %2, %3, %cst {dimension_numbers = #tpu.dot_dimension_numbers<[1], [0], [0], [1], [0, 0, 1, 1], [], []>} : vector<16x40xbf16>, vector<40x512xbf16>, vector<16x512xf32> -> vector<16x512xf32>
    %c0_5 = arith.constant 0 : index
    %c0_6 = arith.constant 0 : index
    %5 = vector.load %arg4[%c0_5, %c0_6] : memref<1x512xf32, #tpu.memory_space<vmem>>, vector<1x512xf32>
    %6 = vector.broadcast %5 : vector<1x512xf32> to vector<16x512xf32>
    %7 = arith.addf %4, %6 : vector<16x512xf32>
    %cst_7 = arith.constant 0.000000e+00 : f32
    %8 = vector.broadcast %cst_7 : f32 to vector<16x512xf32>
    %9 = arith.maximumf %7, %8 : vector<16x512xf32>
    %10 = arith.truncf %9 : vector<16x512xf32> to vector<16x512xbf16>
    %c0_8 = arith.constant 0 : index
    %c0_9 = arith.constant 0 : index
    %11 = vector.load %arg5[%c0_8, %c0_9] : memref<512x16xbf16, #tpu.memory_space<vmem>>, vector<512x16xbf16>
    %cst_10 = arith.constant dense<0.000000e+00> : vector<16x16xf32>
    %12 = tpu.matmul %10, %11, %cst_10 {dimension_numbers = #tpu.dot_dimension_numbers<[1], [0], [0], [1], [0, 0, 1, 1], [], []>} : vector<16x512xbf16>, vector<512x16xbf16>, vector<16x16xf32> -> vector<16x16xf32>
    %c0_11 = arith.constant 0 : index
    %c0_12 = arith.constant 0 : index
    %13 = vector.load %arg6[%c0_11, %c0_12] : memref<1x16xf32, #tpu.memory_space<vmem>>, vector<1x16xf32>
    %14 = vector.broadcast %13 : vector<1x16xf32> to vector<16x16xf32>
    %15 = arith.addf %12, %14 : vector<16x16xf32>
    %cst_13 = arith.constant 0.000000e+00 : f32
    %16 = vector.broadcast %cst_13 : f32 to vector<16x16xf32>
    %17 = arith.maximumf %15, %16 : vector<16x16xf32>
    %c0_14 = arith.constant 0 : index
    %c0_15 = arith.constant 0 : index
    %18 = vector.load %arg7[%c0_14, %c0_15] : memref<1x16xf32, #tpu.memory_space<vmem>>, vector<1x16xf32>
    %19 = vector.broadcast %18 : vector<1x16xf32> to vector<16x16xf32>
    %20 = arith.mulf %17, %19 : vector<16x16xf32>
    %cst_16 = arith.constant dense<0.000000e+00> : vector<16xf32>
    %21 = vector.multi_reduction <add>, %20, %cst_16 [1] : vector<16x16xf32> to vector<16xf32>
    %22 = vector.shape_cast %21 : vector<16xf32> to vector<16x1xf32>
    %c0_17 = arith.constant 0 : index
    %c0_18 = arith.constant 0 : index
    %23 = vector.load %arg8[%c0_17, %c0_18] : memref<1x1xf32, #tpu.memory_space<vmem>>, vector<1x1xf32>
    %24 = vector.broadcast %23 : vector<1x1xf32> to vector<16x1xf32>
    %25 = arith.addf %22, %24 : vector<16x1xf32>
    %cst_19 = arith.constant 0.000000e+00 : f32
    %26 = vector.broadcast %cst_19 : f32 to vector<16x1xf32>
    %27 = arith.subf %26, %25 : vector<16x1xf32>
    %28 = math.exp %27 : vector<16x1xf32>
    %cst_20 = arith.constant 1.000000e+00 : f32
    %29 = vector.broadcast %cst_20 : f32 to vector<16x1xf32>
    %30 = arith.addf %29, %28 : vector<16x1xf32>
    %31 = tpu.reciprocal %30 {approx = true} : vector<16x1xf32> -> vector<16x1xf32>
    %c0_21 = arith.constant 0 : index
    %c0_22 = arith.constant 0 : index
    %32 = vector.load %arg9[%c0_21, %c0_22] : memref<16x1xf32, #tpu.memory_space<vmem>>, vector<16x1xf32>
    tpu.vector_store %arg9[%c0_21, %c0_22], %31 {strides = array<i32>} : memref<16x1xf32, #tpu.memory_space<vmem>>, vector<16x1xf32>,
    return
  }
  func.func @transform_0(%arg0: i32) -> (i32, i32) {
    %c0_i32 = arith.constant 0 : i32
    %c0_i32_0 = arith.constant 0 : i32
    return %arg0, %c0_i32 : i32, i32
  }
  func.func @transform_1(%arg0: i32) -> (i32, i32) {
    %c0_i32 = arith.constant 0 : i32
    %c0_i32_0 = arith.constant 0 : i32
    return %arg0, %c0_i32 : i32, i32
  }
  func.func @transform_2(%arg0: i32) -> (i32, i32) {
    %c0_i32 = arith.constant 0 : i32
    %c0_i32_0 = arith.constant 0 : i32
    %c0_i32_1 = arith.constant 0 : i32
    return %c0_i32, %c0_i32_0 : i32, i32
  }
  func.func @transform_3(%arg0: i32) -> (i32, i32) {
    %c0_i32 = arith.constant 0 : i32
    %c0_i32_0 = arith.constant 0 : i32
    %c0_i32_1 = arith.constant 0 : i32
    return %c0_i32, %c0_i32_0 : i32, i32
  }
  func.func @transform_4(%arg0: i32) -> (i32, i32) {
    %c0_i32 = arith.constant 0 : i32
    %c0_i32_0 = arith.constant 0 : i32
    %c0_i32_1 = arith.constant 0 : i32
    return %c0_i32, %c0_i32_0 : i32, i32
  }
  func.func @transform_5(%arg0: i32) -> (i32, i32) {
    %c0_i32 = arith.constant 0 : i32
    %c0_i32_0 = arith.constant 0 : i32
    %c0_i32_1 = arith.constant 0 : i32
    return %c0_i32, %c0_i32_0 : i32, i32
  }
  func.func @transform_6(%arg0: i32) -> (i32, i32) {
    %c0_i32 = arith.constant 0 : i32
    %c0_i32_0 = arith.constant 0 : i32
    %c0_i32_1 = arith.constant 0 : i32
    return %c0_i32, %c0_i32_0 : i32, i32
  }
  func.func @transform_7(%arg0: i32) -> (i32, i32) {
    %c0_i32 = arith.constant 0 : i32
    %c0_i32_0 = arith.constant 0 : i32
    %c0_i32_1 = arith.constant 0 : i32
    return %c0_i32, %c0_i32_0 : i32, i32
  }
  func.func @transform_8(%arg0: i32) -> (i32, i32) {
    %c0_i32 = arith.constant 0 : i32
    %c0_i32_0 = arith.constant 0 : i32
    return %arg0, %c0_i32 : i32, i32
  }
}

</mosaic_0001>

<bundles_post_ra>
// kernel: tpu_custom_call.1
= control target key start
LH: loop header
LB: loop body
LE: loop exit
PB: predicated region body
PF: predicated region fallthrough
CT: control target
= control target key end

     0   :  { %v794_v1 = vmov 0   ;;  %vm137_vm0 = vcmask 1043456   ;;  %s795_s11 = smov 20   ;;  %vm48_vm1 = vcmask 162816   ;;  %vm134_vm2 = vcmask 326656   ;;  %s991_s1 = inlined_call_operand.vmem [shape: bf16[16,20], index: 1, kind: input, shape index: {}]   ;;  %s992_s2 = inlined_call_operand.vmem [shape: bf16[40,512], index: 2, kind: input, shape index: {}]   ;;  %s993_s0 = inlined_call_operand.vmem [shape: bf16[16,20], index: 0, kind: input, shape index: {}]   ;;  %s994_s4 = inlined_call_operand.vmem [shape: bf16[512,16], index: 4, kind: input, shape index: {}]   ;;  %s995_s3 = inlined_call_operand.vmem [shape: f32[1,512], index: 3, kind: input, shape index: {}]   ;;  %s996_s7 = inlined_call_operand.<no memory space> [shape: f32[1,1], index: 7, kind: input, shape index: {}]   ;;  %s997_s5 = inlined_call_operand.vmem [shape: f32[1,16], index: 5, kind: input, shape index: {}]   ;;  %s998_s6 = inlined_call_operand.vmem [shape: f32[1,16], index: 6, kind: input, shape index: {}]   ;;  %s999_s8 = inlined_call_operand.vmem [shape: f32[16,1], index: 8, kind: output, shape index: {}]  }
   0x1   :  { %v736_v0 = vld [vmem:[%s991_s1] sm:$0xff]   ;;  %182 = vmatprep.mubr.bf16.mxu0 %v794_v1  ;;  %225 = vmatprep.mubr.bf16.mxu1 %v794_v1  ;;  %v61_v3 = vld [vmem:[%s992_s2 + $0x48] sm:$0xff]  ;;  %v754_v18 = vld [vmem:[%s994_s4 + $0x78] sm:$0xff]   ;;  %v64_v53 = vlaneseq  ;;  %vm604_vm3 = vcmask 130048   ;;  %vm630_vm4 = vcmask 7168  }
   0x2   :  { %v60_v2 = vld [vmem:[%s992_s2 + $0x40] sm:$0xff]  ;;  %46 = vrot.lane.b32.xlu0 %v736_v0, %s795_s11  ;;  %v650_v5 = vcombine.high %v61_v3, %v61_v3  ;;  %v649_v7 = vcombine.low %v61_v3, %v61_v3  ;;  %v743_v9 = vld [vmem:[%s992_s2 + $0x2c] ss:$16 sps:$4 sm:$0xff]   ;;  %v746_v13 = vld [vmem:[%s992_s2 + $0x28] ss:$16 sps:$4 sm:$0xff]  }
   0x3   :  { %v648_v4 = vcombine.high %v60_v2, %v60_v2  ;;  %v647_v6 = vcombine.low %v60_v2, %v60_v2  ;;  %v741_v8 = vld [vmem:[%s992_s2 + $0x24] ss:$16 sps:$4 sm:$0xff]   ;;  %v745_v12 = vld [vmem:[%s992_s2 + $0x20] ss:$16 sps:$4 sm:$0xff]   ;;  %v749_v15 = vld [vmem:[%s992_s2 + $0xc] ss:$16 sps:$4 sm:$0xff]  }
   0x4   :  { %653 = vmatprep.subr.msk.bf16.mxu1 %vm137_vm0, %v650_v5  ;;  %v145_v11 = vsel %vm137_vm0, %v649_v7, 0  ;;  %v747_v14 = vld [vmem:[%s992_s2 + $0x4] ss:$16 sps:$4 sm:$0xff]   ;;  %v751_v16 = vld [vmem:[%s992_s2] ss:$16 sps:$4 sm:$0xff]   ;;  %v755_v19 = vld [vmem:[%s994_s4 + $0xf8] sm:$0xff]  }
   0x5   :  { %651 = vmatprep.subr.msk.bf16.mxu0 %vm137_vm0, %v648_v4  ;;  %v139_v10 = vsel %vm137_vm0, %v647_v6, 0  ;;  %204 = vmatpush1.bf16.msra.mxu1 %v145_v11  ;;  %v752_v17 = vld [vmem:[%s992_s2 + $0x8] ss:$16 sps:$4 sm:$0xff]   ;;  %v753_v20 = vld [vmem:[%s993_s0] sm:$0xff]   ;;  %v758_v24 = vld [vmem:[%s994_s4 + $0x70] sm:$0xff]   ;;  %v65_v54 = vshrl.u32 %v64_v53, 7 }
   0x6   :  { %161 = vmatpush1.bf16.msra.mxu0 %v139_v10  ;;  %205 = vmatprep.subr.bf16.mxu1 %v743_v9  ;;  %v756_v21 = vld [vmem:[%s994_s4 + $0x38] sm:$0xff]   ;;  %v759_v25 = vld [vmem:[%s994_s4 + $0xf0] sm:$0xff]   ;;  %v762_v29 = vld [vmem:[%s994_s4 + $0x68] sm:$0xff]  }
   0x7   :  { %162 = vmatprep.subr.bf16.mxu0 %v741_v8  ;;  %v757_v22 = vld [vmem:[%s994_s4 + $0xb8] sm:$0xff]   ;;  %v760_v27 = vld [vmem:[%s994_s4 + $0x30] sm:$0xff]   ;;  %v763_v30 = vld [vmem:[%s994_s4 + $0xe8] sm:$0xff]   ;;  %v70_v55 = vsub.s32 1, %v65_v54  ;;  %v78_v56 = vsub.s32 3, %v65_v54  ;;  %v66_v57 = vsub.s32 0, %v65_v54 }
   0x8   :  { %v761_v28 = vld [vmem:[%s994_s4 + $0xb0] sm:$0xff]   ;;  %v764_v31 = vld [vmem:[%s994_s4 + $0x28] sm:$0xff]   ;;  %v766_v33 = vld [vmem:[%s994_s4 + $0x60] sm:$0xff]   ;;  %v74_v58 = vsub.s32 2, %v65_v54 }
   0x9   :  { %206 = vmatpush1.bf16.msra.mxu1 %v746_v13  ;;  %v765_v32 = vld [vmem:[%s994_s4 + $0xa8] sm:$0xff]   ;;  %v767_v34 = vld [vmem:[%s994_s4 + $0xe0] sm:$0xff]   ;;  %v770_v37 = vld [vmem:[%s994_s4 + $0x58] sm:$0xff]  }
   0xa   :  { %163 = vmatpush1.bf16.msra.mxu0 %v745_v12  ;;  %207 = vmatprep.subr.bf16.mxu1 %v749_v15  ;;  %v768_v35 = vld [vmem:[%s994_s4 + $0x20] sm:$0xff]   ;;  %v771_v38 = vld [vmem:[%s994_s4 + $0xd8] sm:$0xff]   ;;  %v774_v41 = vld [vmem:[%s994_s4 + $0x50] sm:$0xff]  }
   0xb   :  { %164 = vmatprep.subr.bf16.mxu0 %v747_v14  ;;  %v769_v36 = vld [vmem:[%s994_s4 + $0xa0] sm:$0xff]   ;;  %v772_v39 = vld [vmem:[%s994_s4 + $0x18] sm:$0xff]   ;;  %v775_v42 = vld [vmem:[%s994_s4 + $0xd0] sm:$0xff]  }
   0xc   :  { %v773_v40 = vld [vmem:[%s994_s4 + $0x98] sm:$0xff]   ;;  %v776_v43 = vld [vmem:[%s994_s4 + $0x10] sm:$0xff]   ;;  %v778_v45 = vld [vmem:[%s994_s4 + $0x48] sm:$0xff]  }
   0xd   :  { %208 = vmatpush1.bf16.msra.mxu1 %v752_v17  ;;  %v777_v44 = vld [vmem:[%s994_s4 + $0x90] sm:$0xff]   ;;  %v779_v46 = vld [vmem:[%s994_s4 + $0xc8] sm:$0xff]   ;;  %v782_v49 = vld [vmem:[%s994_s4 + $0x40] sm:$0xff]  }
   0xe   :  { %165 = vmatpush1.bf16.msra.mxu0 %v751_v16  ;;  %712 = vmatprep.subr.bf16.mxu1 %v755_v19  ;;  %v780_v47 = vld [vmem:[%s994_s4 + $0x8] sm:$0xff]   ;;  %v783_v50 = vld [vmem:[%s994_s4 + $0xc0] sm:$0xff]  }
   0xf   :  { %690 = vmatprep.subr.bf16.mxu0 %v754_v18  ;;  %v781_v48 = vld [vmem:[%s994_s4 + $0x88] sm:$0xff]   ;;  %v784_v51 = vld [vmem:[%s994_s4] sm:$0xff]  }
  0x10   :  { %v785_v52 = vld [vmem:[%s994_s4 + $0x80] sm:$0xff]  }
  0x11   :  { %v62_v59 = vld [vmem:[%s995_s3] sm:$0xf] }
  0x12   :  { %v71_v62 = vrot.slane %v62_v59, %v70_v55  ;;  %v79_v63 = vrot.slane %v62_v59, %v78_v56  ;;  %v67_v0 = vrot.slane %v62_v59, %v66_v57  ;;  %v75_v1 = vrot.slane %v62_v59, %v74_v58 }
  0x74   :  { %v47_v23 = vpop.permute.xlu0 %46 }
  0x75   :  { %v51_v26 = vsel %vm48_vm1, %v753_v20, %v47_v23 }
  0x76   :  { %652 = vmatmul.mubr.msk.bf16.vlgmr.msra.gmra.mxu0 %vm134_vm2, %v51_v26  ;;  %654 = vmatmul.mubr.msk.bf16.vlgmr.msra.gmra.mxu1 %vm134_vm2, %v51_v26 }
  0x77   :  { %691 = vmatpush3.bf16.msra.mxu0 %v756_v21  ;;  %713 = vmatpush3.bf16.msra.mxu1 %v757_v22 }
  0x78   :  { %692 = vmatprep.subr.bf16.mxu0 %v758_v24  ;;  %714 = vmatprep.subr.bf16.mxu1 %v759_v25 }
  0x7b   :  { %693 = vmatpush3.bf16.msra.mxu0 %v760_v27  ;;  %715 = vmatpush3.bf16.msra.mxu1 %v761_v28  ;;  %v13_v28 = vstv %s996_s7 }
  0x7c   :  { %694 = vmatprep.subr.bf16.mxu0 %v762_v29  ;;  %716 = vmatprep.subr.bf16.mxu1 %v763_v30  ;;  %14 = vst [vmem:[#allocation2] sm:$0x1] %v13_v28 }
  0x7f   :  { %695 = vmatpush3.bf16.msra.mxu0 %v764_v31  ;;  %717 = vmatpush3.bf16.msra.mxu1 %v765_v32  ;;  %v655_v31 = vld [vmem:[%s997_s5] ss:$0 sm:$0xff] }
  0x80   :  { %696 = vmatprep.subr.bf16.mxu0 %v766_v33  ;;  %718 = vmatprep.subr.bf16.mxu1 %v767_v34 }
  0x83   :  { %697 = vmatpush3.bf16.msra.mxu0 %v768_v35  ;;  %719 = vmatpush3.bf16.msra.mxu1 %v769_v36  ;;  %v689_v53 = vld [vmem:[#allocation2] ss:$0 sm:$0xff] }
  0x84   :  { %698 = vmatprep.subr.bf16.mxu0 %v770_v37  ;;  %720 = vmatprep.subr.bf16.mxu1 %v771_v38 }
  0x87   :  { %699 = vmatpush3.bf16.msra.mxu0 %v772_v39  ;;  %721 = vmatpush3.bf16.msra.mxu1 %v773_v40 }
  0x88   :  { %700 = vmatprep.subr.bf16.mxu0 %v774_v41  ;;  %722 = vmatprep.subr.bf16.mxu1 %v775_v42 }
  0x8b   :  { %701 = vmatpush3.bf16.msra.mxu0 %v776_v43  ;;  %723 = vmatpush3.bf16.msra.mxu1 %v777_v44  ;;  %v688_v43 = vld [vmem:[%s998_s6] ss:$0 sm:$0xff] }
  0x8c   :  { %702 = vmatprep.subr.bf16.mxu0 %v778_v45  ;;  %724 = vmatprep.subr.bf16.mxu1 %v779_v46 }
  0x8f   :  { %703 = vmatpush3.bf16.msra.mxu0 %v780_v47  ;;  %725 = vmatpush3.bf16.msra.mxu1 %v781_v48 }
  0x90   :  { %704 = vmatprep.subr.bf16.mxu0 %v782_v49  ;;  %726 = vmatprep.subr.bf16.mxu1 %v783_v50 }
  0x93   :  { %705 = vmatpush3.bf16.msra.mxu0 %v784_v51  ;;  %727 = vmatpush3.bf16.msra.mxu1 %v785_v52 }
 0x136   :  { %v184_v60 = vpop.f32.mrf.mxu0  ;;  %v227_v61 = vpop.f32.mrf.mxu1 }
 0x137   :  { %v185_v10 = vadd.f32 %v184_v60, %v67_v0  ;;  %v228_v11 = vadd.f32 %v227_v61, %v75_v1 }
 0x138   :  { %v186_v2 = vpop.f32.mrf.mxu0  ;;  %v229_v3 = vpop.f32.mrf.mxu1 }
 0x139   :  { %v187_v6 = vadd.f32 %v186_v2, %v71_v62  ;;  %v230_v7 = vadd.f32 %v229_v3, %v79_v63  ;;  %v236_v22 = vmax.f32 %v185_v10, 0.0  ;;  %v238_v23 = vmax.f32 %v228_v11, 0.0 }
 0x13a   :  { %v188_v4 = vpop.f32.mrf.mxu0  ;;  %v231_v5 = vpop.f32.mrf.mxu1 }
 0x13b   :  { %v189_v8 = vadd.f32 %v188_v4, %v67_v0  ;;  %v232_v9 = vadd.f32 %v231_v5, %v75_v1  ;;  %v237_v18 = vmax.f32 %v187_v6, 0.0  ;;  %v239_v19 = vmax.f32 %v230_v7, 0.0 }
 0x13c   :  { %v190_v12 = vpop.f32.mrf.mxu0  ;;  %v233_v13 = vpop.f32.mrf.mxu1 }
 0x13d   :  { %v191_v14 = vadd.f32 %v190_v12, %v71_v62  ;;  %v234_v15 = vadd.f32 %v233_v13, %v79_v63  ;;  %v240_v16 = vmax.f32 %v189_v8, 0.0  ;;  %v242_v17 = vmax.f32 %v232_v9, 0.0 }
 0x13f   :  { %v241_v20 = vmax.f32 %v191_v14, 0.0  ;;  %v243_v21 = vmax.f32 %v234_v15, 0.0  ;;  %v244_v26 = vpack.c.bf16 %v240_v16, %v236_v22  ;;  %v246_v27 = vpack.c.bf16 %v242_v17, %v238_v23 }
 0x141   :  { %v245_v24 = vpack.c.bf16 %v241_v20, %v237_v18  ;;  %v247_v25 = vpack.c.bf16 %v243_v21, %v239_v19 }
 0x143   :  { %543 = vmatprep.mubr.bf16.mxu0 %v245_v24  ;;  %584 = vmatprep.mubr.bf16.mxu1 %v247_v25 }
 0x144   :  { %544 = vmatmul.mubr.bf16.vlgmr.msra.gmra.mxu0 %v244_v26  ;;  %585 = vmatmul.mubr.bf16.vlgmr.msra.gmra.mxu1 %v246_v27 }
 0x204   :  { %v706_v29 = vpop.f32.mrf.mxu0  ;;  %v728_v30 = vpop.f32.mrf.mxu1 }
 0x206   :  { %v707_v32 = vpop.f32.mrf.mxu0  ;;  %v729_v33 = vpop.f32.mrf.mxu1 }
 0x207   :  { %v708_v34 = vadd.f32 %v707_v32, %v706_v29  ;;  %v730_v38 = vadd.f32 %v729_v33, %v728_v30 }
 0x208   :  { %v709_v35 = vpop.f32.mrf.mxu0  ;;  %v731_v36 = vpop.f32.mrf.mxu1 }
 0x209   :  { %v546_v37 = vadd.f32 %v708_v34, %v655_v31 }
 0x20a   :  { %v710_v39 = vpop.f32.mrf.mxu0  ;;  %v732_v40 = vpop.f32.mrf.mxu1 }
 0x20b   :  { %v587_v41 = vadd.f32 %v730_v38, %v546_v37  ;;  %v711_v42 = vadd.f32 %v710_v39, %v709_v35  ;;  %v733_v46 = vadd.f32 %v732_v40, %v731_v36 }
 0x20d   :  { %v593_v44 = vmax.f32 %v587_v41, 0.0  ;;  %v549_v45 = vadd.f32 %v711_v42, %v655_v31 }
 0x20f   :  { %v590_v47 = vadd.f32 %v733_v46, %v549_v45  ;;  %v602_v48 = vmul.f32 %v688_v43, %v593_v44 }
 0x211   :  { %v594_v49 = vmax.f32 %v590_v47, 0.0  ;;  %v605_v50 = vsel %vm604_vm3, %v602_v48, 0.0 }
 0x212   :  { %606 = vadd.xlane.f32.xlu0 %v605_v50 }
 0x213   :  { %v603_v51 = vmul.f32 %v688_v43, %v594_v49 }
 0x215   :  { %v608_v52 = vsel %vm604_vm3, %v603_v51, 0.0 }
 0x216   :  { %609 = vadd.xlane.f32.xlu1 %v608_v52 }
 0x29b   :  { %v607_v54 = vpop.xlane.xlu0 %606 }
 0x29c   :  { %v618_v55 = vadd.f32 %v689_v53, %v607_v54 }
 0x29e   :  { %v620_v56 = vsub.f32 0.0, %v618_v55 }
 0x29f   :  { %v610_v57 = vpop.xlane.xlu1 %609 }
 0x2a0   :  { %v622_v58 = vmul.f32 1.442695, %v620_v56  ;;  %v619_v59 = vadd.f32 %v689_v53, %v610_v57 }
 0x2a2   :  { %786 = vpow2.f32 %v622_v58  ;;  %v621_v60 = vsub.f32 0.0, %v619_v59 }
 0x2a4   :  { %v624_v61 = vmul.f32 1.442695, %v621_v60 }
 0x2a6   :  { %788 = vpow2.f32 %v624_v61 }
 0x2af   :  { %v787_v62 = vpop.eup %786 }
 0x2b0   :  { %v626_v63 = vadd.f32 1.0, %v787_v62 }
 0x2b2   :  { %790 = vrcp.f32 %v626_v63 }
 0x2b3   :  { %v789_v0 = vpop.eup %788 }
 0x2b4   :  { %v627_v1 = vadd.f32 1.0, %v789_v0 }
 0x2b6   :  { %792 = vrcp.f32 %v627_v1 }
 0x2bf   :  { %v791_v2 = vpop.eup %790 }
 0x2c0   :  { %631 = vst.msk [vmem:[%s999_s8] sm:$0xff] %vm630_vm4, %v791_v2 }
 0x2c3   :  { %v793_v3 = vpop.eup %792 }
 0x2c4   :  { %632 = vst.msk [vmem:[%s999_s8 + $0x8] sm:$0xff] %vm630_vm4, %v793_v3 }

</bundles_post_ra>
